<compile_context>
chip_gen: v5e
topology: v5e:2x2
jax: 0.10.0
libtpu: 0.0.40
codegen_flags: <defaults>
</compile_context>

<pallas_src>
import jax
import jax.numpy as jnp
from jax import lax
from jax.experimental import pallas as pl
from jax.experimental.pallas import tpu as pltpu


def _fold_bn(gamma, beta, running_mean, running_var, eps=1e-5):
    scale = gamma / jnp.sqrt(running_var + eps)
    bias = beta - running_mean * scale
    return scale, bias


def _pack_conv3x3_banded(w_oihw, width):
    """(Cout, Cin, 3, 3) -> (3, width*Cin, width*Cout) block-banded matrices.

    band[ky, xi*Cin+ci, xo*Cout+co] = w[co, ci, ky, xi-xo+1] when |xi-xo| <= 1,
    else 0 — i.e. the kx shifts and the SAME W-padding are folded into the
    weight, so a conv over a row-packed (H, width*Cin) activation becomes
        out_row[y] = sum_ky xpadH_row[y+ky] @ band[ky].
    Intended for the small-channel regime (width*C ~ 128..a few hundred).
    """
    cout, cin, _, _ = w_oihw.shape
    wb = jnp.transpose(w_oihw, (2, 3, 1, 0))              # (ky, kx, Cin, Cout)
    # eye[kx, xi, xo] = 1  iff  xi == xo + kx - 1  (shift + W-boundary zeros)
    eye = jnp.stack([jnp.eye(width, k=1 - kx, dtype=w_oihw.dtype)
                     for kx in range(3)])                 # (3, width, width)
    band = jnp.einsum('xio,yxcd->yicod', eye, wb)         # (3, W, Cin, W, Cout)
    return band.reshape(3, width * cin, width * cout)


def _fused_block_kernel(x_ref, w1_ref, s1_ref, b1_ref, w2_ref, s2_ref, b2_ref,
                        out_ref, xpad1_ref, xpad2_ref):
    """Fused conv3x3+BN+ReLU -> conv3x3+BN(+identity)+ReLU, one batch element.

    Shapes per grid step (WC* = W * C*, lane-dense):
      x_ref  : (1, H, WCin)        packed NHWC input tile (f32)
      w1_ref : (3, WCin, WCmid)    conv1 banded weights (compute dtype)
      s1/b1  : (1, WCmid)          folded BN1 scale / bias (f32)
      w2_ref : (3, WCmid, WCout)   conv2 banded weights
      s2/b2  : (1, WCout)          folded BN2 scale / bias
      out_ref: (1, H, WCout)
      xpad1  : VMEM (H+2, WCin)    H-padded input scratch (compute dtype)
      xpad2  : VMEM (H+2, WCmid)   H-padded intermediate scratch
    """
    _, H, WCin = x_ref.shape
    WCmid = w1_ref.shape[2]
    WCout = w2_ref.shape[2]
    cdt = xpad1_ref.dtype

    x = x_ref[0]                      # (H, WCin) f32; read once, reused below.

    # ---- conv1 + bn1 + relu ------------------------------------------------
    # Zero only the two H-pad rows, every step (NOT program_id-gated: scratch
    # state is per-core under megacore grid splitting). Interior is overwritten.
    xpad1_ref[pl.ds(0, 1), :] = jnp.zeros((1, WCin), cdt)
    xpad1_ref[pl.ds(H + 1, 1), :] = jnp.zeros((1, WCin), cdt)
    xpad1_ref[pl.ds(1, H), :] = x.astype(cdt)

    acc = jnp.zeros((H, WCmid), jnp.float32)
    for ky in range(3):               # 3 accumulating MXU matmuls, K = WCin
        acc = acc + jnp.dot(xpad1_ref[pl.ds(ky, H), :], w1_ref[ky],
                            preferred_element_type=jnp.float32)
    y1 = jnp.maximum(acc * s1_ref[...] + b1_ref[...], 0.0)       # f32 epilogue

    # ---- conv2 + bn2 + identity residual + relu (intermediate stays in VMEM)
    xpad2_ref[pl.ds(0, 1), :] = jnp.zeros((1, WCmid), cdt)
    xpad2_ref[pl.ds(H + 1, 1), :] = jnp.zeros((1, WCmid), cdt)
    xpad2_ref[pl.ds(1, H), :] = y1.astype(cdt)

    acc2 = jnp.zeros((H, WCout), jnp.float32)
    for ky in range(3):
        acc2 = acc2 + jnp.dot(xpad2_ref[pl.ds(ky, H), :], w2_ref[ky],
                              preferred_element_type=jnp.float32)
    y2 = acc2 * s2_ref[...] + b2_ref[...] + x.astype(jnp.float32)
    out_ref[0] = jnp.maximum(y2, 0.0).astype(out_ref.dtype)   # lane-dense store


def resnet_basic_block_nhwc(x_nhwc, params, compute_dtype=jnp.bfloat16):
    """ResNetBasicBlock forward (stride=1, downsample=None, eval BN), NHWC API.

    This is the production entry point: keeping activations NHWC end-to-end
    avoids the HBM round-trip of NCHW<->NHWC transposes.  `compute_dtype` is
    what feeds the MXU (bf16 default = fast path on v6e/v7x; pass jnp.float32
    for bit-tight comparison).  Accumulation and the epilogue are always f32.
    """
    w1, g1, b1, m1, v1, w2, g2, b2, m2, v2 = params
    N, H, W, Cin = x_nhwc.shape
    Cmid = w1.shape[0]
    Cout = w2.shape[0]
    if Cin != Cout:
        raise ValueError("identity residual requires in_channels == out_channels")

    s1, o1 = _fold_bn(g1, b1, m1, v1)
    s2, o2 = _fold_bn(g2, b2, m2, v2)
    w1b = _pack_conv3x3_banded(w1, W).astype(compute_dtype)  # (3, W*Cin, W*Cmid)
    w2b = _pack_conv3x3_banded(w2, W).astype(compute_dtype)  # (3, W*Cmid, W*Cout)
    # BN scale/bias pre-tiled to the packed (W*C) lane layout; kept f32.
    s1r = jnp.tile(s1, W).reshape(1, W * Cmid).astype(jnp.float32)
    b1r = jnp.tile(o1, W).reshape(1, W * Cmid).astype(jnp.float32)
    s2r = jnp.tile(s2, W).reshape(1, W * Cout).astype(jnp.float32)
    b2r = jnp.tile(o2, W).reshape(1, W * Cout).astype(jnp.float32)

    xp = x_nhwc.reshape(N, H, W * Cin)        # free reshape (merge trailing dims)

    out = pl.pallas_call(
        _fused_block_kernel,
        out_shape=jax.ShapeDtypeStruct((N, H, W * Cout), x_nhwc.dtype),
        grid_spec=pltpu.PrefetchScalarGridSpec(
            num_scalar_prefetch=0,
            grid=(N,),
            in_specs=[
                pl.BlockSpec((1, H, W * Cin), lambda n: (n, 0, 0)),
                pl.BlockSpec((3, W * Cin, W * Cmid), lambda n: (0, 0, 0)),
                pl.BlockSpec((1, W * Cmid), lambda n: (0, 0)),
                pl.BlockSpec((1, W * Cmid), lambda n: (0, 0)),
                pl.BlockSpec((3, W * Cmid, W * Cout), lambda n: (0, 0, 0)),
                pl.BlockSpec((1, W * Cout), lambda n: (0, 0)),
                pl.BlockSpec((1, W * Cout), lambda n: (0, 0)),
            ],
            out_specs=pl.BlockSpec((1, H, W * Cout), lambda n: (n, 0, 0)),
            scratch_shapes=[
                pltpu.VMEM((H + 2, W * Cin), compute_dtype),
                pltpu.VMEM((H + 2, W * Cmid), compute_dtype),
            ],
        ),
        compiler_params=pltpu.CompilerParams(
            dimension_semantics=("parallel",),
            vmem_limit_bytes=32 * 1024 * 1024,
        ),
    )(xp, w1b, s1r, b1r, w2b, s2r, b2r)

    return out.reshape(N, H, W, Cout)


def resnet_basic_block(x_nchw, params, compute_dtype=jnp.bfloat16):
    """Drop-in shim matching the PyTorch module's NCHW interface.

    The two transposes are interface glue only; in a network that keeps
    activations NHWC, call `resnet_basic_block_nhwc` directly (no HBM
    transpose round-trips).
    """
    x = jnp.transpose(x_nchw, (0, 2, 3, 1))
    out = resnet_basic_block_nhwc(x, params, compute_dtype)
    return jnp.transpose(out, (0, 3, 1, 2))


def _reference_block(x, params):
    """Plain-JAX NCHW reference (mirrors the PyTorch forward in eval mode)."""
    w1, g1, b1, m1, v1, w2, g2, b2, m2, v2 = params
    s1, o1 = _fold_bn(g1, b1, m1, v1)
    s2, o2 = _fold_bn(g2, b2, m2, v2)
    dn = ('NCHW', 'OIHW', 'NCHW')
    y = lax.conv_general_dilated(x, w1, (1, 1), 'SAME', dimension_numbers=dn)
    y = y * s1[None, :, None, None] + o1[None, :, None, None]
    y = jnp.maximum(y, 0.0)
    z = lax.conv_general_dilated(y, w2, (1, 1), 'SAME', dimension_numbers=dn)
    z = z * s2[None, :, None, None] + o2[None, :, None, None]
    return jnp.maximum(z + x, 0.0)


if __name__ == "__main__":
    # batch=2, in_channels=out_channels=8, spatial 16x16 (W*C = 128 lane-dense),
    # width_factor=1 -> identity residual (module defaults: stride=1, no downsample).
    N, C, H, W = 2, 8, 16, 16

    key = jax.random.PRNGKey(0)
    keys = jax.random.split(key, 11)
    x_nchw = jax.random.normal(keys[0], (N, C, H, W), dtype=jnp.float32)

    w1 = 0.1 * jax.random.normal(keys[1], (C, C, 3, 3), dtype=jnp.float32)
    w2 = 0.1 * jax.random.normal(keys[2], (C, C, 3, 3), dtype=jnp.float32)
    g1 = jax.random.uniform(keys[3], (C,), minval=0.5, maxval=1.5)
    b1 = 0.1 * jax.random.normal(keys[4], (C,), dtype=jnp.float32)
    m1 = 0.1 * jax.random.normal(keys[5], (C,), dtype=jnp.float32)
    v1 = jax.random.uniform(keys[6], (C,), minval=0.5, maxval=1.5)
    g2 = jax.random.uniform(keys[7], (C,), minval=0.5, maxval=1.5)
    b2 = 0.1 * jax.random.normal(keys[8], (C,), dtype=jnp.float32)
    m2 = 0.1 * jax.random.normal(keys[9], (C,), dtype=jnp.float32)
    v2 = jax.random.uniform(keys[10], (C,), minval=0.5, maxval=1.5)
    params = (w1, g1, b1, m1, v1, w2, g2, b2, m2, v2)

    ref_nchw = _reference_block(x_nchw, params)
    ref_nhwc = jnp.transpose(ref_nchw, (0, 2, 3, 1))
    x_nhwc = jnp.transpose(x_nchw, (0, 2, 3, 1))

    # 1) f32 MXU path: bit-tight vs. the f32 reference.
    out_f32 = jax.jit(lambda a, p: resnet_basic_block_nhwc(a, p, jnp.float32))(
        x_nhwc, params)
    out_f32 = jax.block_until_ready(out_f32)
    assert out_f32.shape == (N, H, W, C)
    err32 = float(jnp.max(jnp.abs(out_f32 - ref_nhwc)))
    assert jnp.allclose(out_f32, ref_nhwc, atol=1e-4, rtol=1e-4), err32

    # 2) Default bf16 MXU path (f32 accumulation/epilogue): loose tolerance.
    out_bf = jax.jit(resnet_basic_block_nhwc)(x_nhwc, params)
    out_bf = jax.block_until_ready(out_bf)
    errbf = float(jnp.max(jnp.abs(out_bf - ref_nhwc)))
    assert jnp.allclose(out_bf, ref_nhwc, atol=1e-1, rtol=1e-1), errbf

    # 3) NCHW drop-in shim (interface parity with the PyTorch module).
    out_nchw = jax.jit(resnet_basic_block)(x_nchw, params)
    out_nchw = jax.block_until_ready(out_nchw)
    assert out_nchw.shape == (N, C, H, W)
    assert jnp.allclose(out_nchw, ref_nchw, atol=1e-1, rtol=1e-1)

    print("KERNEL_OK")
</pallas_src>

<mosaic_0001>
module attributes {stable_mosaic.version = 11 : i64} {
  func.func @_fused_block_kernel(%arg0: i32, %arg1: memref<1x16x128xf32, #tpu.memory_space<vmem>>, %arg2: memref<3x128x128xf32, #tpu.memory_space<vmem>>, %arg3: memref<1x128xf32, #tpu.memory_space<vmem>>, %arg4: memref<1x128xf32, #tpu.memory_space<vmem>>, %arg5: memref<3x128x128xf32, #tpu.memory_space<vmem>>, %arg6: memref<1x128xf32, #tpu.memory_space<vmem>>, %arg7: memref<1x128xf32, #tpu.memory_space<vmem>>, %arg8: memref<1x16x128xf32, #tpu.memory_space<vmem>>, %arg9: memref<18x128xf32, #tpu.memory_space<vmem>>, %arg10: memref<18x128xf32, #tpu.memory_space<vmem>>) attributes {dimension_semantics = [#tpu.dimension_semantics<parallel>], iteration_bounds = array<i64: 2>, scalar_prefetch = 0 : i64, scratch_operands = 2 : i64, tpu.core_type = #tpu.core_type<tc>, window_params = [{transform_indices = @transform_0, window_bounds = array<i64: 1, 16, 128>}, {pipeline_mode = #tpu.pipeline_mode<synchronous>, transform_indices = @transform_1, window_bounds = array<i64: 3, 128, 128>}, {pipeline_mode = #tpu.pipeline_mode<synchronous>, transform_indices = @transform_2, window_bounds = array<i64: 1, 128>}, {pipeline_mode = #tpu.pipeline_mode<synchronous>, transform_indices = @transform_3, window_bounds = array<i64: 1, 128>}, {pipeline_mode = #tpu.pipeline_mode<synchronous>, transform_indices = @transform_4, window_bounds = array<i64: 3, 128, 128>}, {pipeline_mode = #tpu.pipeline_mode<synchronous>, transform_indices = @transform_5, window_bounds = array<i64: 1, 128>}, {pipeline_mode = #tpu.pipeline_mode<synchronous>, transform_indices = @transform_6, window_bounds = array<i64: 1, 128>}, {transform_indices = @transform_7, window_bounds = array<i64: 1, 16, 128>}]} {
    %c0 = arith.constant 0 : index
    %c0_0 = arith.constant 0 : index
    %c0_1 = arith.constant 0 : index
    %0 = vector.load %arg1[%c0, %c0_0, %c0_1] : memref<1x16x128xf32, #tpu.memory_space<vmem>>, vector<1x16x128xf32>
    %1 = vector.shape_cast %0 : vector<1x16x128xf32> to vector<16x128xf32>
    %cst = arith.constant 0.000000e+00 : f32
    %2 = vector.broadcast %cst : f32 to vector<1x128xf32>
    %c0_2 = arith.constant 0 : index
    %c0_3 = arith.constant 0 : index
    %3 = vector.load %arg9[%c0_2, %c0_3] : memref<18x128xf32, #tpu.memory_space<vmem>>, vector<1x128xf32>
    tpu.vector_store %arg9[%c0_2, %c0_3], %2 {strides = array<i32>} : memref<18x128xf32, #tpu.memory_space<vmem>>, vector<1x128xf32>,
    %cst_4 = arith.constant 0.000000e+00 : f32
    %4 = vector.broadcast %cst_4 : f32 to vector<1x128xf32>
    %c17 = arith.constant 17 : index
    %c0_5 = arith.constant 0 : index
    %5 = vector.load %arg9[%c17, %c0_5] : memref<18x128xf32, #tpu.memory_space<vmem>>, vector<1x128xf32>
    tpu.vector_store %arg9[%c17, %c0_5], %4 {strides = array<i32>} : memref<18x128xf32, #tpu.memory_space<vmem>>, vector<1x128xf32>,
    %c1 = arith.constant 1 : index
    %c0_6 = arith.constant 0 : index
    %6 = vector.load %arg9[%c1, %c0_6] : memref<18x128xf32, #tpu.memory_space<vmem>>, vector<16x128xf32>
    tpu.vector_store %arg9[%c1, %c0_6], %1 {strides = array<i32>} : memref<18x128xf32, #tpu.memory_space<vmem>>, vector<16x128xf32>,
    %cst_7 = arith.constant 0.000000e+00 : f32
    %7 = vector.broadcast %cst_7 : f32 to vector<16x128xf32>
    %c0_8 = arith.constant 0 : index
    %c0_9 = arith.constant 0 : index
    %8 = vector.load %arg9[%c0_8, %c0_9] : memref<18x128xf32, #tpu.memory_space<vmem>>, vector<16x128xf32>
    %c0_10 = arith.constant 0 : index
    %c0_11 = arith.constant 0 : index
    %c0_12 = arith.constant 0 : index
    %9 = vector.load %arg2[%c0_10, %c0_11, %c0_12] : memref<3x128x128xf32, #tpu.memory_space<vmem>>, vector<1x128x128xf32>
    %10 = vector.shape_cast %9 : vector<1x128x128xf32> to vector<128x128xf32>
    %cst_13 = arith.constant dense<0.000000e+00> : vector<16x128xf32>
    %11 = tpu.matmul %8, %10, %cst_13 {dimension_numbers = #tpu.dot_dimension_numbers<[1], [0], [0], [1], [0, 0, 1, 1], [], []>} : vector<16x128xf32>, vector<128x128xf32>, vector<16x128xf32> -> vector<16x128xf32>
    %12 = arith.addf %7, %11 : vector<16x128xf32>
    %c1_14 = arith.constant 1 : index
    %c0_15 = arith.constant 0 : index
    %13 = vector.load %arg9[%c1_14, %c0_15] : memref<18x128xf32, #tpu.memory_space<vmem>>, vector<16x128xf32>
    %c1_16 = arith.constant 1 : index
    %c0_17 = arith.constant 0 : index
    %c0_18 = arith.constant 0 : index
    %14 = vector.load %arg2[%c1_16, %c0_17, %c0_18] : memref<3x128x128xf32, #tpu.memory_space<vmem>>, vector<1x128x128xf32>
    %15 = vector.shape_cast %14 : vector<1x128x128xf32> to vector<128x128xf32>
    %cst_19 = arith.constant dense<0.000000e+00> : vector<16x128xf32>
    %16 = tpu.matmul %13, %15, %cst_19 {dimension_numbers = #tpu.dot_dimension_numbers<[1], [0], [0], [1], [0, 0, 1, 1], [], []>} : vector<16x128xf32>, vector<128x128xf32>, vector<16x128xf32> -> vector<16x128xf32>
    %17 = arith.addf %12, %16 : vector<16x128xf32>
    %c2 = arith.constant 2 : index
    %c0_20 = arith.constant 0 : index
    %18 = vector.load %arg9[%c2, %c0_20] : memref<18x128xf32, #tpu.memory_space<vmem>>, vector<16x128xf32>
    %c2_21 = arith.constant 2 : index
    %c0_22 = arith.constant 0 : index
    %c0_23 = arith.constant 0 : index
    %19 = vector.load %arg2[%c2_21, %c0_22, %c0_23] : memref<3x128x128xf32, #tpu.memory_space<vmem>>, vector<1x128x128xf32>
    %20 = vector.shape_cast %19 : vector<1x128x128xf32> to vector<128x128xf32>
    %cst_24 = arith.constant dense<0.000000e+00> : vector<16x128xf32>
    %21 = tpu.matmul %18, %20, %cst_24 {dimension_numbers = #tpu.dot_dimension_numbers<[1], [0], [0], [1], [0, 0, 1, 1], [], []>} : vector<16x128xf32>, vector<128x128xf32>, vector<16x128xf32> -> vector<16x128xf32>
    %22 = arith.addf %17, %21 : vector<16x128xf32>
    %c0_25 = arith.constant 0 : index
    %c0_26 = arith.constant 0 : index
    %23 = vector.load %arg3[%c0_25, %c0_26] : memref<1x128xf32, #tpu.memory_space<vmem>>, vector<1x128xf32>
    %24 = vector.broadcast %23 : vector<1x128xf32> to vector<16x128xf32>
    %25 = arith.mulf %22, %24 : vector<16x128xf32>
    %c0_27 = arith.constant 0 : index
    %c0_28 = arith.constant 0 : index
    %26 = vector.load %arg4[%c0_27, %c0_28] : memref<1x128xf32, #tpu.memory_space<vmem>>, vector<1x128xf32>
    %27 = vector.broadcast %26 : vector<1x128xf32> to vector<16x128xf32>
    %28 = arith.addf %25, %27 : vector<16x128xf32>
    %cst_29 = arith.constant 0.000000e+00 : f32
    %29 = vector.broadcast %cst_29 : f32 to vector<16x128xf32>
    %30 = arith.maximumf %28, %29 : vector<16x128xf32>
    %cst_30 = arith.constant 0.000000e+00 : f32
    %31 = vector.broadcast %cst_30 : f32 to vector<1x128xf32>
    %c0_31 = arith.constant 0 : index
    %c0_32 = arith.constant 0 : index
    %32 = vector.load %arg10[%c0_31, %c0_32] : memref<18x128xf32, #tpu.memory_space<vmem>>, vector<1x128xf32>
    tpu.vector_store %arg10[%c0_31, %c0_32], %31 {strides = array<i32>} : memref<18x128xf32, #tpu.memory_space<vmem>>, vector<1x128xf32>,
    %cst_33 = arith.constant 0.000000e+00 : f32
    %33 = vector.broadcast %cst_33 : f32 to vector<1x128xf32>
    %c17_34 = arith.constant 17 : index
    %c0_35 = arith.constant 0 : index
    %34 = vector.load %arg10[%c17_34, %c0_35] : memref<18x128xf32, #tpu.memory_space<vmem>>, vector<1x128xf32>
    tpu.vector_store %arg10[%c17_34, %c0_35], %33 {strides = array<i32>} : memref<18x128xf32, #tpu.memory_space<vmem>>, vector<1x128xf32>,
    %c1_36 = arith.constant 1 : index
    %c0_37 = arith.constant 0 : index
    %35 = vector.load %arg10[%c1_36, %c0_37] : memref<18x128xf32, #tpu.memory_space<vmem>>, vector<16x128xf32>
    tpu.vector_store %arg10[%c1_36, %c0_37], %30 {strides = array<i32>} : memref<18x128xf32, #tpu.memory_space<vmem>>, vector<16x128xf32>,
    %cst_38 = arith.constant 0.000000e+00 : f32
    %36 = vector.broadcast %cst_38 : f32 to vector<16x128xf32>
    %c0_39 = arith.constant 0 : index
    %c0_40 = arith.constant 0 : index
    %37 = vector.load %arg10[%c0_39, %c0_40] : memref<18x128xf32, #tpu.memory_space<vmem>>, vector<16x128xf32>
    %c0_41 = arith.constant 0 : index
    %c0_42 = arith.constant 0 : index
    %c0_43 = arith.constant 0 : index
    %38 = vector.load %arg5[%c0_41, %c0_42, %c0_43] : memref<3x128x128xf32, #tpu.memory_space<vmem>>, vector<1x128x128xf32>
    %39 = vector.shape_cast %38 : vector<1x128x128xf32> to vector<128x128xf32>
    %cst_44 = arith.constant dense<0.000000e+00> : vector<16x128xf32>
    %40 = tpu.matmul %37, %39, %cst_44 {dimension_numbers = #tpu.dot_dimension_numbers<[1], [0], [0], [1], [0, 0, 1, 1], [], []>} : vector<16x128xf32>, vector<128x128xf32>, vector<16x128xf32> -> vector<16x128xf32>
    %41 = arith.addf %36, %40 : vector<16x128xf32>
    %c1_45 = arith.constant 1 : index
    %c0_46 = arith.constant 0 : index
    %42 = vector.load %arg10[%c1_45, %c0_46] : memref<18x128xf32, #tpu.memory_space<vmem>>, vector<16x128xf32>
    %c1_47 = arith.constant 1 : index
    %c0_48 = arith.constant 0 : index
    %c0_49 = arith.constant 0 : index
    %43 = vector.load %arg5[%c1_47, %c0_48, %c0_49] : memref<3x128x128xf32, #tpu.memory_space<vmem>>, vector<1x128x128xf32>
    %44 = vector.shape_cast %43 : vector<1x128x128xf32> to vector<128x128xf32>
    %cst_50 = arith.constant dense<0.000000e+00> : vector<16x128xf32>
    %45 = tpu.matmul %42, %44, %cst_50 {dimension_numbers = #tpu.dot_dimension_numbers<[1], [0], [0], [1], [0, 0, 1, 1], [], []>} : vector<16x128xf32>, vector<128x128xf32>, vector<16x128xf32> -> vector<16x128xf32>
    %46 = arith.addf %41, %45 : vector<16x128xf32>
    %c2_51 = arith.constant 2 : index
    %c0_52 = arith.constant 0 : index
    %47 = vector.load %arg10[%c2_51, %c0_52] : memref<18x128xf32, #tpu.memory_space<vmem>>, vector<16x128xf32>
    %c2_53 = arith.constant 2 : index
    %c0_54 = arith.constant 0 : index
    %c0_55 = arith.constant 0 : index
    %48 = vector.load %arg5[%c2_53, %c0_54, %c0_55] : memref<3x128x128xf32, #tpu.memory_space<vmem>>, vector<1x128x128xf32>
    %49 = vector.shape_cast %48 : vector<1x128x128xf32> to vector<128x128xf32>
    %cst_56 = arith.constant dense<0.000000e+00> : vector<16x128xf32>
    %50 = tpu.matmul %47, %49, %cst_56 {dimension_numbers = #tpu.dot_dimension_numbers<[1], [0], [0], [1], [0, 0, 1, 1], [], []>} : vector<16x128xf32>, vector<128x128xf32>, vector<16x128xf32> -> vector<16x128xf32>
    %51 = arith.addf %46, %50 : vector<16x128xf32>
    %c0_57 = arith.constant 0 : index
    %c0_58 = arith.constant 0 : index
    %52 = vector.load %arg6[%c0_57, %c0_58] : memref<1x128xf32, #tpu.memory_space<vmem>>, vector<1x128xf32>
    %53 = vector.broadcast %52 : vector<1x128xf32> to vector<16x128xf32>
    %54 = arith.mulf %51, %53 : vector<16x128xf32>
    %c0_59 = arith.constant 0 : index
    %c0_60 = arith.constant 0 : index
    %55 = vector.load %arg7[%c0_59, %c0_60] : memref<1x128xf32, #tpu.memory_space<vmem>>, vector<1x128xf32>
    %56 = vector.broadcast %55 : vector<1x128xf32> to vector<16x128xf32>
    %57 = arith.addf %54, %56 : vector<16x128xf32>
    %58 = arith.addf %57, %1 : vector<16x128xf32>
    %cst_61 = arith.constant 0.000000e+00 : f32
    %59 = vector.broadcast %cst_61 : f32 to vector<16x128xf32>
    %60 = arith.maximumf %58, %59 : vector<16x128xf32>
    %c0_62 = arith.constant 0 : index
    %c0_63 = arith.constant 0 : index
    %c0_64 = arith.constant 0 : index
    %61 = vector.load %arg8[%c0_62, %c0_63, %c0_64] : memref<1x16x128xf32, #tpu.memory_space<vmem>>, vector<1x16x128xf32>
    %62 = vector.shape_cast %61 : vector<1x16x128xf32> to vector<16x128xf32>
    %63 = vector.shape_cast %60 : vector<16x128xf32> to vector<1x16x128xf32>
    tpu.vector_store %arg8[%c0_62, %c0_63, %c0_64], %63 {strides = array<i32>} : memref<1x16x128xf32, #tpu.memory_space<vmem>>, vector<1x16x128xf32>,
    return
  }
  func.func @transform_0(%arg0: i32) -> (i32, i32, i32) {
    %c0_i32 = arith.constant 0 : i32
    %c0_i32_0 = arith.constant 0 : i32
    %c0_i32_1 = arith.constant 0 : i32
    return %arg0, %c0_i32, %c0_i32_0 : i32, i32, i32
  }
  func.func @transform_1(%arg0: i32) -> (i32, i32, i32) {
    %c0_i32 = arith.constant 0 : i32
    %c0_i32_0 = arith.constant 0 : i32
    %c0_i32_1 = arith.constant 0 : i32
    %c0_i32_2 = arith.constant 0 : i32
    return %c0_i32, %c0_i32_0, %c0_i32_1 : i32, i32, i32
  }
  func.func @transform_2(%arg0: i32) -> (i32, i32) {
    %c0_i32 = arith.constant 0 : i32
    %c0_i32_0 = arith.constant 0 : i32
    %c0_i32_1 = arith.constant 0 : i32
    return %c0_i32, %c0_i32_0 : i32, i32
  }
  func.func @transform_3(%arg0: i32) -> (i32, i32) {
    %c0_i32 = arith.constant 0 : i32
    %c0_i32_0 = arith.constant 0 : i32
    %c0_i32_1 = arith.constant 0 : i32
    return %c0_i32, %c0_i32_0 : i32, i32
  }
  func.func @transform_4(%arg0: i32) -> (i32, i32, i32) {
    %c0_i32 = arith.constant 0 : i32
    %c0_i32_0 = arith.constant 0 : i32
    %c0_i32_1 = arith.constant 0 : i32
    %c0_i32_2 = arith.constant 0 : i32
    return %c0_i32, %c0_i32_0, %c0_i32_1 : i32, i32, i32
  }
  func.func @transform_5(%arg0: i32) -> (i32, i32) {
    %c0_i32 = arith.constant 0 : i32
    %c0_i32_0 = arith.constant 0 : i32
    %c0_i32_1 = arith.constant 0 : i32
    return %c0_i32, %c0_i32_0 : i32, i32
  }
  func.func @transform_6(%arg0: i32) -> (i32, i32) {
    %c0_i32 = arith.constant 0 : i32
    %c0_i32_0 = arith.constant 0 : i32
    %c0_i32_1 = arith.constant 0 : i32
    return %c0_i32, %c0_i32_0 : i32, i32
  }
  func.func @transform_7(%arg0: i32) -> (i32, i32, i32) {
    %c0_i32 = arith.constant 0 : i32
    %c0_i32_0 = arith.constant 0 : i32
    %c0_i32_1 = arith.constant 0 : i32
    return %arg0, %c0_i32, %c0_i32_0 : i32, i32, i32
  }
}

</mosaic_0001>

<bundles_post_ra>
// kernel: tile.23
= control target key start
LH: loop header
LB: loop body
LE: loop exit
PB: predicated region body
PF: predicated region fallthrough
CT: control target
= control target key end

     0   :  { %s28_s0 = inlined_call_operand.vmem [shape: f32[8], index: 0, kind: input, shape index: {}]   ;;  %s29_s1 = inlined_call_operand.vmem [shape: f32[16,8], index: 1, kind: output, shape index: {}]  }
   0x1   :  { %v4_v0 = vld [vmem:[%s28_s0] ss:$0 sm:$0xff] }
   0x2   :  { %5 = vst [vmem:[%s29_s1] sm:$0xff] %v4_v0 }
   0x3   :  { %8 = vst [vmem:[%s29_s1 + $0x8] sm:$0xff] %v4_v0 }

// kernel: tile.24
= control target key start
LH: loop header
LB: loop body
LE: loop exit
PB: predicated region body
PF: predicated region fallthrough
CT: control target
= control target key end

     0   :  { %s131_s10 = smov 120   ;;  %s132_s11 = smov 104   ;;  %vm3_vm0 = vcmask 64512   ;;  %vm9_vm1 = vcmask 1048512   ;;  %vm15_vm2 = vcmask 982912   ;;  %vm21_vm3 = vcmask 917312   ;;  %s207_s0 = inlined_call_operand.vmem [shape: f32[16,8], index: 0, kind: input, shape index: {}]   ;;  %s208_s1 = inlined_call_operand.vmem [shape: f32[1,128], index: 1, kind: output, shape index: {}]  }
   0x1   :  { %v101_v0 = vld [vmem:[%s207_s0 + $0xf] sm:$0x1]   ;;  %v103_v1 = vld [vmem:[%s207_s0 + $0xd] sm:$0x1]   ;;  %v105_v2 = vld [vmem:[%s207_s0 + $0xb] sm:$0x1]  }
   0x2   :  { %7 = vrot.lane.b32.xlu0 %v101_v0, %s131_s10  ;;  %19 = vrot.lane.b32.xlu1 %v103_v1, %s132_s11  ;;  %s133_s14 = smov 88   ;;  %v102_v3 = vld [vmem:[%s207_s0 + $0xe] sm:$0x1]   ;;  %v104_v4 = vld [vmem:[%s207_s0 + $0xc] sm:$0x1]   ;;  %s134_s19 = smov 112  }
   0x3   :  { %31 = vrot.lane.b32.xlu2 %v105_v2, %s133_s14  ;;  %s135_s20 = smov 96   ;;  %v106_v5 = vld [vmem:[%s207_s0 + $0xa] sm:$0x1]   ;;  %s136_s23 = smov 80   ;;  %v107_v6 = vld [vmem:[%s207_s0 + $0x9] sm:$0x1]  }
   0x4   :  { %v108_v7 = vld [vmem:[%s207_s0 + $0x8] sm:$0x1]   ;;  %s137_s28 = smov 72   ;;  %s138_s29 = smov 64   ;;  %v109_v8 = vld [vmem:[%s207_s0 + $0x7] sm:$0x1]  }
   0x5   :  { %s139_s3 = smov 56   ;;  %v110_v9 = vld [vmem:[%s207_s0 + $0x6] sm:$0x1]   ;;  %v111_v10 = vld [vmem:[%s207_s0 + $0x5] sm:$0x1]   ;;  %s140_s8 = smov 48  }
   0x6   :  { %s141_s9 = smov 40   ;;  %v112_v11 = vld [vmem:[%s207_s0 + $0x4] sm:$0x1]   ;;  %s142_s12 = smov 32   ;;  %v113_v12 = vld [vmem:[%s207_s0 + $0x3] sm:$0x1]  }
   0x7   :  { %v114_v13 = vld [vmem:[%s207_s0 + $0x2] sm:$0x1]   ;;  %s143_s17 = smov 24   ;;  %s144_s18 = smov 16   ;;  %v115_v14 = vld [vmem:[%s207_s0 + $0x1] sm:$0x1]  }
   0x8   :  { %s145_s21 = smov 8   ;;  %v2_v15 = vld [vmem:[%s207_s0] sm:$0x1]   ;;  %vm27_vm4 = vcmask 851712   ;;  %vm33_vm5 = vcmask 786112   ;;  %vm39_vm6 = vcmask 720512  }
   0x9   :  { %4 = vst.msk [vmem:[#allocation0] sm:$0x1] %vm3_vm0, %v2_v15   ;;  %vm45_vm7 = vcmask 654912   ;;  %vm51_vm8 = vcmask 589312   ;;  %vm57_vm9 = vcmask 523712   ;;  %vm63_vm10 = vcmask 458112  }
   0xa   :  { %13 = vrot.lane.b32.xlu0 %v102_v3, %s134_s19  ;;  %25 = vrot.lane.b32.xlu1 %v104_v4, %s135_s20  ;;  %vm69_vm11 = vcmask 392512   ;;  %vm75_vm12 = vcmask 326912   ;;  %vm81_vm13 = vcmask 261312   ;;  %vm87_vm14 = vcmask 195712  }
   0xb   :  { %37 = vrot.lane.b32.xlu2 %v106_v5, %s136_s23  ;;  %vm93_vm15 = vcmask 130112  }
  0x12   :  { %43 = vrot.lane.b32.xlu0 %v107_v6, %s137_s28  ;;  %49 = vrot.lane.b32.xlu1 %v108_v7, %s138_s29 }
  0x13   :  { %55 = vrot.lane.b32.xlu2 %v109_v8, %s139_s3 }
  0x1a   :  { %61 = vrot.lane.b32.xlu0 %v110_v9, %s140_s8  ;;  %67 = vrot.lane.b32.xlu1 %v111_v10, %s141_s9 }
  0x1b   :  { %73 = vrot.lane.b32.xlu2 %v112_v11, %s142_s12 }
  0x22   :  { %79 = vrot.lane.b32.xlu0 %v113_v12, %s143_s17  ;;  %85 = vrot.lane.b32.xlu1 %v114_v13, %s144_s18 }
  0x23   :  { %91 = vrot.lane.b32.xlu2 %v115_v14, %s145_s21 }
  0x5d   :  { %v32_v16 = vpop.permute.xlu2 %31  }
  0x65   :  { %v38_v17 = vpop.permute.xlu2 %37  }
  0x6d   :  { %v56_v18 = vpop.permute.xlu2 %55  }
  0x74   :  { %v8_v19 = vpop.permute.xlu0 %7   ;;  %v20_v20 = vpop.permute.xlu1 %19  }
  0x75   :  { %10 = vst.msk [vmem:[#allocation0] sm:$0x1] %vm9_vm1, %v8_v19   ;;  %v74_v21 = vpop.permute.xlu2 %73  }
  0x7c   :  { %v14_v22 = vpop.permute.xlu0 %13   ;;  %v26_v23 = vpop.permute.xlu1 %25  }
  0x7d   :  { %16 = vst.msk [vmem:[#allocation0] sm:$0x1] %vm15_vm2, %v14_v22   ;;  %v92_v24 = vpop.permute.xlu2 %91  }
  0x7e   :  { %22 = vst.msk [vmem:[#allocation0] sm:$0x1] %vm21_vm3, %v20_v20  }
  0x7f   :  { %28 = vst.msk [vmem:[#allocation0] sm:$0x1] %vm27_vm4, %v26_v23  }
  0x80   :  { %34 = vst.msk [vmem:[#allocation0] sm:$0x1] %vm33_vm5, %v32_v16  }
  0x81   :  { %40 = vst.msk [vmem:[#allocation0] sm:$0x1] %vm39_vm6, %v38_v17  }
  0x84   :  { %v44_v25 = vpop.permute.xlu0 %43   ;;  %v50_v26 = vpop.permute.xlu1 %49  }
  0x85   :  { %46 = vst.msk [vmem:[#allocation0] sm:$0x1] %vm45_vm7, %v44_v25  }
  0x86   :  { %52 = vst.msk [vmem:[#allocation0] sm:$0x1] %vm51_vm8, %v50_v26  }
  0x87   :  { %58 = vst.msk [vmem:[#allocation0] sm:$0x1] %vm57_vm9, %v56_v18  }
  0x8c   :  { %v62_v27 = vpop.permute.xlu0 %61   ;;  %v68_v28 = vpop.permute.xlu1 %67  }
  0x8d   :  { %64 = vst.msk [vmem:[#allocation0] sm:$0x1] %vm63_vm10, %v62_v27  }
  0x8e   :  { %70 = vst.msk [vmem:[#allocation0] sm:$0x1] %vm69_vm11, %v68_v28  }
  0x8f   :  { %76 = vst.msk [vmem:[#allocation0] sm:$0x1] %vm75_vm12, %v74_v21  }
  0x94   :  { %v80_v29 = vpop.permute.xlu0 %79   ;;  %v86_v30 = vpop.permute.xlu1 %85  }
  0x95   :  { %82 = vst.msk [vmem:[#allocation0] sm:$0x1] %vm81_vm13, %v80_v29  }
  0x96   :  { %88 = vst.msk [vmem:[#allocation0] sm:$0x1] %vm87_vm14, %v86_v30  }
  0x97   :  { %94 = vst.msk [vmem:[#allocation0] sm:$0x1] %vm93_vm15, %v92_v24  }
  0x9e   :  { %v97_v31 = vld [vmem:[#allocation0] sm:$0x1] }
  0x9f   :  { %100 = vst [vmem:[%s208_s1] sm:$0x1] %v97_v31 }

// kernel: _lambda_.1
= control target key start
LH: loop header
LB: loop body
LE: loop exit
PB: predicated region body
PF: predicated region fallthrough
CT: control target
= control target key end

     0   :  { %s801_s24 = smov 0   ;;  %s1141_s0 = inlined_call_operand.vmem [shape: f32[2,16,128], index: 0, kind: input, shape index: {}]   ;;  %s1142_s1 = inlined_call_operand.vmem [shape: f32[3,128,128], index: 1, kind: input, shape index: {}]   ;;  %s1143_s2 = inlined_call_operand.vmem [shape: f32[1,128], index: 2, kind: input, shape index: {}]   ;;  %s1144_s3 = inlined_call_operand.vmem [shape: f32[1,128], index: 3, kind: input, shape index: {}]   ;;  %s1145_s4 = inlined_call_operand.vmem [shape: f32[3,128,128], index: 4, kind: input, shape index: {}]   ;;  %s1146_s5 = inlined_call_operand.vmem [shape: f32[1,128], index: 5, kind: input, shape index: {}]   ;;  %s1147_s6 = inlined_call_operand.vmem [shape: f32[1,128], index: 6, kind: input, shape index: {}]   ;;  %s1148_s7 = inlined_call_operand.vmem [shape: f32[2,16,128], index: 7, kind: output, shape index: {}]  }
   0x1 LB: > { %s630_s25 = sadd.s32 4294967295, %s758_s24   ;;  %p634_p0 = scmp.ge.s32.totalorder %s758_s24, 1  ;;  %s758_s24 = sphi %s801_s24, %s17_s24  }
   0x2   : > { %p237_p1 = scmp.lt.s32.totalorder %s758_s24, 3 }
   0x4   : > { %p238_p2 = pnand %p634_p0, %p237_p1 }
   0x5   : > { %p818_p3 = scmp.lt.s32.totalorder (!%p238_p2), %s630_s25, 1 }
   0x6   : > { %241 = sbr.rel (%p238_p2) target bundleno = 344 (0x158), region = 48 }
   0xb   : > { %v670_v0 = vld [vmem:[%s1142_s1 + $0x178] sm:$0xff]  ;;  %v669_v1 = vld [vmem:[%s1142_s1 + $0x170] sm:$0xff]  ;;  %v760_v5 = vmov 0.0   ;;  %v668_v6 = vld [vmem:[%s1142_s1 + $0x168] sm:$0xff]  ;;  %s1151_s25 = smov (!%p818_p3, %s630_s25), 1 }
   0xc   : > { %v654_v2 = vld [vmem:[%s1142_s1 + $0xf8] sm:$0xff]  ;;  %387 = vmatpush.msra.mxu2 %v670_v0  ;;  %v653_v4 = vld [vmem:[%s1142_s1 + $0xf0] sm:$0xff]  ;;  %281 = vst [vmem:[#allocation2] sm:$0x1] %v760_v5  ;;  %v652_v8 = vld [vmem:[%s1142_s1 + $0xe8] sm:$0xff]  ;;  %s705_s17 = sshll.u32 %s1151_s25, 4 }
   0xd   : > { %322 = vmatpush.msra.mxu0 %v654_v2  ;;  %v302_v3 = vld [vmem:[%s1142_s1 + $0x78] sm:$0xff]  ;;  %v301_v7 = vld [vmem:[%s1142_s1 + $0x70] sm:$0xff]  ;;  %282 = vst [vmem:[#allocation2 + $0x11] sm:$0x1] %v760_v5  ;;  %v300_v9 = vld [vmem:[%s1142_s1 + $0x68] sm:$0xff]  ;;  %s273_s30 = scalar_lea.vmem %s1141_s0, %s705_s17  ;;  %s278_s8 = scalar_lea.vmem %s1148_s7, %s705_s17 }
   0xe   : > { %345 = vmatpush.msra.mxu1 %v302_v3  ;;  %388 = vmatpush.msra.mxu2 %v669_v1  ;;  %426 = vst [vmem:[#allocation3] sm:$0x1] %v760_v5  ;;  %v667_v10 = vld [vmem:[%s1142_s1 + $0x160] sm:$0xff]  ;;  %v666_v13 = vld [vmem:[%s1142_s1 + $0x158] sm:$0xff]  ;;  %v665_v16 = vld [vmem:[%s1142_s1 + $0x150] sm:$0xff] }
   0xf   : > { %323 = vmatpush.msra.mxu0 %v653_v4  ;;  %v651_v11 = vld [vmem:[%s1142_s1 + $0xe0] sm:$0xff]  ;;  %427 = vst [vmem:[#allocation3 + $0x11] sm:$0x1] %v760_v5  ;;  %v650_v14 = vld [vmem:[%s1142_s1 + $0xd8] sm:$0xff]  ;;  %v649_v17 = vld [vmem:[%s1142_s1 + $0xd0] sm:$0xff] }
  0x10   : > { %346 = vmatpush.msra.mxu1 %v301_v7  ;;  %389 = vmatpush.msra.mxu2 %v668_v6  ;;  %v299_v12 = vld [vmem:[%s1142_s1 + $0x60] sm:$0xff]  ;;  %v298_v15 = vld [vmem:[%s1142_s1 + $0x58] sm:$0xff]  ;;  %v297_v18 = vld [vmem:[%s1142_s1 + $0x50] sm:$0xff] }
  0x11   : > { %324 = vmatpush.msra.mxu0 %v652_v8  ;;  %v664_v19 = vld [vmem:[%s1142_s1 + $0x148] sm:$0xff]  ;;  %v663_v22 = vld [vmem:[%s1142_s1 + $0x140] sm:$0xff]  ;;  %v662_v25 = vld [vmem:[%s1142_s1 + $0x138] sm:$0xff] }
  0x12   : > { %347 = vmatpush.msra.mxu1 %v300_v9  ;;  %390 = vmatpush.msra.mxu2 %v667_v10  ;;  %v648_v20 = vld [vmem:[%s1142_s1 + $0xc8] sm:$0xff]  ;;  %v647_v23 = vld [vmem:[%s1142_s1 + $0xc0] sm:$0xff]  ;;  %v646_v26 = vld [vmem:[%s1142_s1 + $0xb8] sm:$0xff] }
  0x13   : > { %325 = vmatpush.msra.mxu0 %v651_v11  ;;  %v296_v21 = vld [vmem:[%s1142_s1 + $0x48] sm:$0xff]  ;;  %v295_v24 = vld [vmem:[%s1142_s1 + $0x40] sm:$0xff]  ;;  %v294_v28 = vld [vmem:[%s1142_s1 + $0x38] sm:$0xff] }
  0x14   : > { %348 = vmatpush.msra.mxu1 %v299_v12  ;;  %391 = vmatpush.msra.mxu2 %v666_v13  ;;  %v901_v27 = vld [vmem:[%s273_s30] sm:$0xff]  ;;  %v906_v29 = vld [vmem:[%s273_s30 + $0x8] sm:$0xff]  ;;  %v661_v30 = vld [vmem:[%s1142_s1 + $0x130] sm:$0xff] }
  0x15   : > { %326 = vmatpush.msra.mxu0 %v650_v14  ;;  %283 = vst [vmem:[#allocation2 + $0x1] sm:$0xff] %v901_v27  ;;  %v645_v31 = vld [vmem:[%s1142_s1 + $0xb0] sm:$0xff]  ;;  %v686_v32 = vld [vmem:[%s1145_s4 + $0xf8] sm:$0xff]  ;;  %v660_v35 = vld [vmem:[%s1142_s1 + $0x128] sm:$0xff] }
  0x16   : > { %349 = vmatpush.msra.mxu1 %v298_v15  ;;  %392 = vmatpush.msra.mxu2 %v665_v16  ;;  %284 = vst [vmem:[#allocation2 + $0x9] sm:$0xff] %v906_v29  ;;  %v293_v33 = vld [vmem:[%s1142_s1 + $0x30] sm:$0xff]  ;;  %v644_v36 = vld [vmem:[%s1142_s1 + $0xa8] sm:$0xff]  ;;  %v659_v39 = vld [vmem:[%s1142_s1 + $0x120] sm:$0xff] }
  0x17   : > { %327 = vmatpush.msra.mxu0 %v649_v17  ;;  %v685_v34 = vld [vmem:[%s1145_s4 + $0xf0] sm:$0xff]  ;;  %467 = vmatpush.msra.mxu3 %v686_v32  ;;  %v292_v37 = vld [vmem:[%s1142_s1 + $0x28] sm:$0xff]  ;;  %v643_v40 = vld [vmem:[%s1142_s1 + $0xa0] sm:$0xff] }
  0x18   : > { %350 = vmatpush.msra.mxu1 %v297_v18  ;;  %393 = vmatpush.msra.mxu2 %v664_v19  ;;  %v684_v38 = vld [vmem:[%s1145_s4 + $0xe8] sm:$0xff]  ;;  %v291_v41 = vld [vmem:[%s1142_s1 + $0x20] sm:$0xff]  ;;  %v658_v43 = vld [vmem:[%s1142_s1 + $0x118] sm:$0xff] }
  0x19   : > { %328 = vmatpush.msra.mxu0 %v648_v20  ;;  %468 = vmatpush.msra.mxu3 %v685_v34  ;;  %v683_v42 = vld [vmem:[%s1145_s4 + $0xe0] sm:$0xff]  ;;  %v642_v44 = vld [vmem:[%s1142_s1 + $0x98] sm:$0xff]  ;;  %v657_v45 = vld [vmem:[%s1142_s1 + $0x110] sm:$0xff] }
  0x1a   : > { %351 = vmatpush.msra.mxu1 %v296_v21  ;;  %394 = vmatpush.msra.mxu2 %v663_v22  ;;  %v290_v46 = vld [vmem:[%s1142_s1 + $0x18] sm:$0xff]  ;;  %v656_v48 = vld [vmem:[%s1142_s1 + $0x108] sm:$0xff]  ;;  %v641_v49 = vld [vmem:[%s1142_s1 + $0x90] sm:$0xff] }
  0x1b   : > { %329 = vmatpush.msra.mxu0 %v647_v23  ;;  %469 = vmatpush.msra.mxu3 %v684_v38  ;;  %v682_v47 = vld [vmem:[%s1145_s4 + $0xd8] sm:$0xff]  ;;  %v289_v50 = vld [vmem:[%s1142_s1 + $0x10] sm:$0xff]  ;;  %v640_v52 = vld [vmem:[%s1142_s1 + $0x88] sm:$0xff] }
  0x1c   : > { %352 = vmatpush.msra.mxu1 %v295_v24  ;;  %395 = vmatpush.msra.mxu2 %v662_v25  ;;  %v681_v51 = vld [vmem:[%s1145_s4 + $0xd0] sm:$0xff]  ;;  %v288_v53 = vld [vmem:[%s1142_s1 + $0x8] sm:$0xff]  ;;  %v655_v55 = vld [vmem:[%s1142_s1 + $0x100] sm:$0xff] }
  0x1d   : > { %330 = vmatpush.msra.mxu0 %v646_v26  ;;  %470 = vmatpush.msra.mxu3 %v683_v42  ;;  %v680_v54 = vld [vmem:[%s1145_s4 + $0xc8] sm:$0xff]  ;;  %v639_v56 = vld [vmem:[%s1142_s1 + $0x80] sm:$0xff]  ;;  %v447_v61 = vld [vmem:[%s1145_s4 + $0x78] sm:$0xff] }
  0x1e   : > { %353 = vmatpush.msra.mxu1 %v294_v28  ;;  %396 = vmatpush.msra.mxu2 %v661_v30  ;;  %v368_v57 = vld [vmem:[#allocation2 + $0x2] sm:$0xff]  ;;  %v702_v62 = vld [vmem:[%s1145_s4 + $0x178] sm:$0xff]  ;;  %v446_v0 = vld [vmem:[%s1145_s4 + $0x70] sm:$0xff] }
  0x1f   : > { %331 = vmatpush.msra.mxu0 %v645_v31  ;;  %471 = vmatpush.msra.mxu3 %v682_v47  ;;  %v287_v58 = vld [vmem:[%s1142_s1] sm:$0xff]  ;;  %v678_v63 = vld [vmem:[%s1145_s4 + $0xb8] sm:$0xff]  ;;  %v701_v1 = vld [vmem:[%s1145_s4 + $0x170] sm:$0xff] }
  0x20   : > { %354 = vmatpush.msra.mxu1 %v293_v33  ;;  %397 = vmatpush.msra.mxu2 %v660_v35  ;;  %v285_v59 = vld [vmem:[#allocation2] sm:$0xff]  ;;  %v677_v2 = vld [vmem:[%s1145_s4 + $0xb0] sm:$0xff]  ;;  %v445_v3 = vld [vmem:[%s1145_s4 + $0x68] sm:$0xff] }
  0x21   : > { %332 = vmatpush.msra.mxu0 %v644_v36  ;;  %472 = vmatpush.msra.mxu3 %v681_v51  ;;  %v679_v60 = vld [vmem:[%s1145_s4 + $0xc0] sm:$0xff]  ;;  %v369_v4 = vld [vmem:[#allocation2 + $0xa] sm:$0xff]  ;;  %v443_v9 = vld [vmem:[%s1145_s4 + $0x58] sm:$0xff] }
  0x22   : > { %355 = vmatpush.msra.mxu1 %v292_v37  ;;  %398 = vmatpush.msra.mxu2 %v659_v39  ;;  %v676_v5 = vld [vmem:[%s1145_s4 + $0xa8] sm:$0xff]  ;;  %v444_v7 = vld [vmem:[%s1145_s4 + $0x60] sm:$0xff]  ;;  %v674_v10 = vld [vmem:[%s1145_s4 + $0x98] sm:$0xff] }
  0x23   : > { %333 = vmatpush.msra.mxu0 %v643_v40  ;;  %473 = vmatpush.msra.mxu3 %v680_v54  ;;  %v286_v6 = vld [vmem:[#allocation2 + $0x8] sm:$0xff]  ;;  %v675_v8 = vld [vmem:[%s1145_s4 + $0xa0] sm:$0xff]  ;;  %v442_v11 = vld [vmem:[%s1145_s4 + $0x50] sm:$0xff] }
  0x24   : > { %356 = vmatpush.msra.mxu1 %v291_v41  ;;  %399 = vmatpush.msra.mxu2 %v658_v43  ;;  %v673_v12 = vld [vmem:[%s1145_s4 + $0x90] sm:$0xff]  ;;  %v672_v13 = vld [vmem:[%s1145_s4 + $0x88] sm:$0xff]  ;;  %v671_v14 = vld [vmem:[%s1145_s4 + $0x80] sm:$0xff] }
  0x25   : > { %334 = vmatpush.msra.mxu0 %v642_v44  ;;  %474 = vmatpush.msra.mxu3 %v679_v60  ;;  %v441_v15 = vld [vmem:[%s1145_s4 + $0x48] sm:$0xff]  ;;  %v440_v17 = vld [vmem:[%s1145_s4 + $0x40] sm:$0xff]  ;;  %v439_v19 = vld [vmem:[%s1145_s4 + $0x38] sm:$0xff] }
  0x26   : > { %357 = vmatpush.msra.mxu1 %v290_v46  ;;  %400 = vmatpush.msra.mxu2 %v657_v45  ;;  %v700_v16 = vld [vmem:[%s1145_s4 + $0x168] sm:$0xff]  ;;  %v699_v18 = vld [vmem:[%s1145_s4 + $0x160] sm:$0xff]  ;;  %v698_v20 = vld [vmem:[%s1145_s4 + $0x158] sm:$0xff] }
  0x27   : > { %335 = vmatpush.msra.mxu0 %v641_v49  ;;  %475 = vmatpush.msra.mxu3 %v678_v63  ;;  %v438_v21 = vld [vmem:[%s1145_s4 + $0x30] sm:$0xff]  ;;  %v437_v23 = vld [vmem:[%s1145_s4 + $0x28] sm:$0xff]  ;;  %v436_v25 = vld [vmem:[%s1145_s4 + $0x20] sm:$0xff] }
  0x28   : > { %358 = vmatpush.msra.mxu1 %v289_v50  ;;  %401 = vmatpush.msra.mxu2 %v656_v48  ;;  %v697_v22 = vld [vmem:[%s1145_s4 + $0x150] sm:$0xff]  ;;  %v696_v24 = vld [vmem:[%s1145_s4 + $0x148] sm:$0xff]  ;;  %v695_v26 = vld [vmem:[%s1145_s4 + $0x140] sm:$0xff] }
  0x29   : > { %336 = vmatpush.msra.mxu0 %v640_v52  ;;  %476 = vmatpush.msra.mxu3 %v677_v2  ;;  %v435_v28 = vld [vmem:[%s1145_s4 + $0x18] sm:$0xff]  ;;  %v434_v31 = vld [vmem:[%s1145_s4 + $0x10] sm:$0xff]  ;;  %v433_v33 = vld [vmem:[%s1145_s4 + $0x8] sm:$0xff] }
  0x2a   : > { %359 = vmatpush.msra.mxu1 %v288_v53  ;;  %402 = vmatpush.msra.mxu2 %v655_v55  ;;  %v694_v30 = vld [vmem:[%s1145_s4 + $0x138] sm:$0xff]  ;;  %v693_v32 = vld [vmem:[%s1145_s4 + $0x130] sm:$0xff]  ;;  %v692_v34 = vld [vmem:[%s1145_s4 + $0x128] sm:$0xff] }
  0x2b   : > { %337 = vmatpush.msra.mxu0 %v639_v56  ;;  %403 = vmatmul.f32.vlgmr.msra.gmra.mxu2 %v368_v57  ;;  %v432_v35 = vld [vmem:[%s1145_s4] sm:$0xff]  ;;  %v690_v37 = vld [vmem:[%s1145_s4 + $0x118] sm:$0xff]  ;;  %v689_v38 = vld [vmem:[%s1145_s4 + $0x110] sm:$0xff] }
  0x2c   : > { %360 = vmatpush.msra.mxu1 %v287_v58  ;;  %338 = vmatmul.f32.vlgmr.msra.gmra.mxu0 %v901_v27  ;;  %v691_v36 = vld [vmem:[%s1145_s4 + $0x120] sm:$0xff]  ;;  %v688_v39 = vld [vmem:[%s1145_s4 + $0x108] sm:$0xff] }
  0x2d   : > { %361 = vmatmul.f32.vlgmr.msra.gmra.mxu1 %v285_v59  ;;  %490 = vmatpush.msrb.mxu0 %v447_v61  ;;  %v687_v40 = vld [vmem:[%s1145_s4 + $0x100] sm:$0xff] }
  0x2e   : > { %707 = vmatpush.msrb.mxu2 %v447_v61  ;;  %532 = vmatpush.msrb.mxu1 %v702_v62  ;;  %v748_v44 = vld [vmem:[%s1143_s2] ss:$0 sm:$0xff] }
  0x2f   : > { %491 = vmatpush.msrb.mxu0 %v446_v0  ;;  %477 = vmatpush.msra.mxu3 %v676_v5  ;;  %v749_v47 = vld [vmem:[%s1144_s3] ss:$0 sm:$0xff] }
  0x30   : > { %708 = vmatpush.msrb.mxu2 %v446_v0  ;;  %533 = vmatpush.msrb.mxu1 %v701_v1 }
  0x31   : > { %492 = vmatpush.msrb.mxu0 %v445_v3  ;;  %478 = vmatpush.msra.mxu3 %v675_v8 }
  0x32   : > { %709 = vmatpush.msrb.mxu2 %v445_v3  ;;  %534 = vmatpush.msrb.mxu1 %v700_v16  ;;  %v750_v3 = vld [vmem:[%s1146_s5] ss:$0 sm:$0xff] }
  0x33   : > { %406 = vmatmul.f32.gmra.mxu2 %v369_v4  ;;  %493 = vmatpush.msrb.mxu0 %v444_v7 }
  0x34   : > { %341 = vmatmul.f32.gmra.mxu0 %v906_v29  ;;  %710 = vmatpush.msrb.mxu2 %v444_v7 }
  0x35   : > { %364 = vmatmul.f32.gmra.mxu1 %v286_v6  ;;  %494 = vmatpush.msrb.mxu0 %v443_v9  ;;  %v751_v6 = vld [vmem:[%s1147_s6] ss:$0 sm:$0xff] }
  0x36   : > { %479 = vmatpush.msra.mxu3 %v674_v10  ;;  %711 = vmatpush.msrb.mxu2 %v443_v9 }
  0x37   : > { %495 = vmatpush.msrb.mxu0 %v442_v11  ;;  %535 = vmatpush.msrb.mxu1 %v699_v18 }
  0x38   : > { %480 = vmatpush.msra.mxu3 %v673_v12  ;;  %712 = vmatpush.msrb.mxu2 %v442_v11 }
  0x39   : > { %496 = vmatpush.msrb.mxu0 %v441_v15  ;;  %536 = vmatpush.msrb.mxu1 %v698_v20 }
  0x3a   : > { %481 = vmatpush.msra.mxu3 %v672_v13  ;;  %713 = vmatpush.msrb.mxu2 %v441_v15 }
  0x3b   : > { %497 = vmatpush.msrb.mxu0 %v440_v17  ;;  %537 = vmatpush.msrb.mxu1 %v697_v22 }
  0x3c   : > { %482 = vmatpush.msra.mxu3 %v671_v14  ;;  %714 = vmatpush.msrb.mxu2 %v440_v17 }
  0x3d   : > { %498 = vmatpush.msrb.mxu0 %v439_v19  ;;  %538 = vmatpush.msrb.mxu1 %v696_v24 }
  0x3e   : > { %723 = vmatpush.msrb.mxu3 %v702_v62  ;;  %715 = vmatpush.msrb.mxu2 %v439_v19 }
  0x3f   : > { %499 = vmatpush.msrb.mxu0 %v438_v21  ;;  %539 = vmatpush.msrb.mxu1 %v695_v26 }
  0x40   : > { %724 = vmatpush.msrb.mxu3 %v701_v1  ;;  %716 = vmatpush.msrb.mxu2 %v438_v21 }
  0x41   : > { %500 = vmatpush.msrb.mxu0 %v437_v23  ;;  %540 = vmatpush.msrb.mxu1 %v694_v30 }
  0x42   : > { %725 = vmatpush.msrb.mxu3 %v700_v16  ;;  %717 = vmatpush.msrb.mxu2 %v437_v23 }
  0x43   : > { %501 = vmatpush.msrb.mxu0 %v436_v25  ;;  %541 = vmatpush.msrb.mxu1 %v693_v32 }
  0x44   : > { %726 = vmatpush.msrb.mxu3 %v699_v18  ;;  %718 = vmatpush.msrb.mxu2 %v436_v25 }
  0x45   : > { %502 = vmatpush.msrb.mxu0 %v435_v28  ;;  %542 = vmatpush.msrb.mxu1 %v692_v34 }
  0x46   : > { %727 = vmatpush.msrb.mxu3 %v698_v20  ;;  %719 = vmatpush.msrb.mxu2 %v435_v28 }
  0x47   : > { %503 = vmatpush.msrb.mxu0 %v434_v31  ;;  %543 = vmatpush.msrb.mxu1 %v691_v36 }
  0x48   : > { %728 = vmatpush.msrb.mxu3 %v697_v22  ;;  %720 = vmatpush.msrb.mxu2 %v434_v31 }
  0x49   : > { %504 = vmatpush.msrb.mxu0 %v433_v33  ;;  %544 = vmatpush.msrb.mxu1 %v690_v37 }
  0x4a   : > { %729 = vmatpush.msrb.mxu3 %v696_v24  ;;  %721 = vmatpush.msrb.mxu2 %v433_v33 }
  0x4b   : > { %505 = vmatpush.msrb.mxu0 %v432_v35  ;;  %545 = vmatpush.msrb.mxu1 %v689_v38 }
  0x4c   : > { %730 = vmatpush.msrb.mxu3 %v695_v26  ;;  %722 = vmatpush.msrb.mxu2 %v432_v35 }
  0x4d   : > { %546 = vmatpush.msrb.mxu1 %v688_v39 }
  0x4e   : > { %731 = vmatpush.msrb.mxu3 %v694_v30 }
  0x4f   : > { %547 = vmatpush.msrb.mxu1 %v687_v40 }
  0x50   : > { %732 = vmatpush.msrb.mxu3 %v693_v32 }
  0x52   : > { %733 = vmatpush.msrb.mxu3 %v692_v34 }
  0x54   : > { %734 = vmatpush.msrb.mxu3 %v691_v36 }
  0x56   : > { %735 = vmatpush.msrb.mxu3 %v690_v37 }
  0x58   : > { %736 = vmatpush.msrb.mxu3 %v689_v38 }
  0x5a   : > { %737 = vmatpush.msrb.mxu3 %v688_v39 }
  0x5c   : > { %738 = vmatpush.msrb.mxu3 %v687_v40 }
  0xa9   : > { %v339_v41 = vpop.f32.mrf.mxu0 }
  0xaa   : > { %v362_v42 = vpop.f32.mrf.mxu1 }
  0xab   : > { %v363_v43 = vadd.f32 %v362_v42, %v339_v41 }
  0xae   : > { %v404_v45 = vpop.f32.mrf.mxu2 }
  0xaf   : > { %v410_v46 = vadd.f32 %v404_v45, %v363_v43 }
  0xb1   : > { %v416_v48 = vmul.f32 %v748_v44, %v410_v46  ;;  %v342_v49 = vpop.f32.mrf.mxu0 }
  0xb2   : > { %v365_v50 = vpop.f32.mrf.mxu1 }
  0xb3   : > { %v422_v51 = vadd.f32 %v749_v47, %v416_v48  ;;  %v366_v52 = vadd.f32 %v365_v50, %v342_v49 }
  0xb5   : > { %v424_v53 = vmax.f32 %v422_v51, 0.0 }
  0xb6   : > { %v407_v54 = vpop.f32.mrf.mxu2 }
  0xb7   : > { %428 = vst [vmem:[#allocation3 + $0x1] sm:$0xff] %v424_v53  ;;  %v411_v55 = vadd.f32 %v407_v54, %v366_v52  ;;  %483 = vmatmul.f32.vlgmr.msra.gmra.mxu3 %v424_v53 }
  0xb9   : > { %v417_v56 = vmul.f32 %v748_v44, %v411_v55 }
  0xbb   : > { %v423_v57 = vadd.f32 %v749_v47, %v417_v56 }
  0xbd   : > { %v425_v58 = vmax.f32 %v423_v57, 0.0 }
  0xbe   : > { %v430_v59 = vld [vmem:[#allocation3] sm:$0xff] }
  0xbf   : > { %429 = vst [vmem:[#allocation3 + $0x9] sm:$0xff] %v425_v58  ;;  %506 = vmatmul.f32.vlgmr.msrb.gmra.mxu0 %v430_v59  ;;  %486 = vmatmul.f32.gmra.mxu3 %v425_v58 }
  0xc6   : > { %v431_v60 = vld [vmem:[#allocation3 + $0x8] sm:$0xff] }
  0xc7   : > { %v513_v61 = vld [vmem:[#allocation3 + $0x2] sm:$0xff]  ;;  %v514_v62 = vld [vmem:[#allocation3 + $0xa] sm:$0xff]  ;;  %509 = vmatmul.f32.vlgmr.msrb.gmra.mxu2 %v431_v60 }
  0xc8   : > { %548 = vmatmul.f32.vlgmr.msrb.gmra.mxu1 %v513_v61  ;;  %551 = vmatmul.f32.vlgmr.msrb.gmra.mxu3 %v514_v62 }
 0x13a   : > { %v484_v63 = vpop.f32.mrf.mxu3 }
 0x13c   : > { %v507_v0 = vpop.f32.mrf.mxu0 }
 0x13d   : > { %v508_v2 = vadd.f32 %v507_v0, %v484_v63 }
 0x142   : > { %v487_v1 = vpop.f32.mrf.mxu3 }
 0x145   : > { %v549_v4 = vpop.f32.mrf.mxu1 }
 0x146   : > { %v555_v5 = vadd.f32 %v549_v4, %v508_v2 }
 0x148   : > { %v561_v7 = vmul.f32 %v750_v3, %v555_v5 }
 0x14a   : > { %v567_v8 = vadd.f32 %v751_v6, %v561_v7  ;;  %v510_v9 = vpop.f32.mrf.mxu2 }
 0x14b   : > { %v511_v11 = vadd.f32 %v510_v9, %v487_v1  ;;  %v552_v12 = vpop.f32.mrf.mxu3 }
 0x14c   : > { %v569_v10 = vadd.f32 %v567_v8, %v901_v27 }
 0x14d   : > { %v556_v14 = vadd.f32 %v552_v12, %v511_v11 }
 0x14e   : > { %v571_v13 = vmax.f32 %v569_v10, 0.0 }
 0x14f   : > { %v562_v15 = vmul.f32 %v750_v3, %v556_v14 }
 0x150   : > { %573 = vst [vmem:[%s278_s8] sm:$0xff] %v571_v13 }
 0x151   : > { %v568_v16 = vadd.f32 %v751_v6, %v562_v15 }
 0x153   : > { %v570_v17 = vadd.f32 %v568_v16, %v906_v29 }
 0x155   : > { %v572_v18 = vmax.f32 %v570_v17, 0.0 }
 0x157   : > { %574 = vst [vmem:[%s278_s8 + $0x8] sm:$0xff] %v572_v18 }
 0x158 PF: > { %s17_s24 = sadd.s32 1, %s758_s24  }
 0x159   : > { %p14_p4 = scmp.ge.s32.totalorder %s17_s24, 4  }
 0x15b   :  { %16 = sbr.rel (!%p14_p4) target bundleno = 1 (0x1), region = 82 }

</bundles_post_ra>
